<compile_context>
chip_gen: v7x
topology: tpu7x:2x2x1
jax: 0.10.0
libtpu: 0.0.40
codegen_flags: <defaults>
</compile_context>

<pallas_src>
import functools
import math

import jax
import jax.numpy as jnp
import numpy as np
from jax.experimental import pallas as pl
from jax.experimental.pallas import tpu as pltpu


def _round_up(x: int, m: int) -> int:
    return ((x + m - 1) // m) * m


def _vmem_physical_bytes() -> int:
    """Physical VMEM per TensorCore (trace-time query, conservative fallback)."""
    try:
        info = pltpu.get_tpu_info()
        for attr in ("vmem_capacity_bytes", "vmem_bytes"):
            v = getattr(info, attr, None)
            if v:
                return int(v)
    except Exception:
        pass
    return 64 * 1024 * 1024  # v7x per-TC physical VMEM (the smallest generation)


# ---------------------------------------------------------------------------
# One-time parameter preparation (outside jit): fused, coordinate-major,
# lane-padded, bf16 weight block for the single projection kernel.
# Column layout:  [ q|k|v scalar (3*H*C_hidden, padded to 128) |
#                   q_pts (3*HPq_pad) | k_pts (3*HPq_pad) | v_pts (3*HPv_pad) ]
# Point blocks are coordinate-major: [x-chunk | y-chunk | z-chunk], each chunk
# is H*P columns (h-major, p-minor) zero-padded to a multiple of 128 lanes.
# ---------------------------------------------------------------------------
def prepare_fused_projection_weights(params, *, c_s, num_heads, c_hidden,
                                     num_qk_points, num_v_points):
    H = num_heads
    HC = H * c_hidden
    Dsc = 3 * HC
    Dsc_pad = _round_up(Dsc, 128)

    def pts_block(w, b, P):
        hp = H * P
        hp_pad = _round_up(hp, 128)
        # multimer column layout is [h, coord, p]; reorder to [coord, h, p]
        w_cm = w.reshape(c_s, H, 3, P).transpose(0, 2, 1, 3).reshape(c_s, 3, hp)
        b_cm = b.reshape(H, 3, P).transpose(1, 0, 2).reshape(3, hp)
        if hp_pad != hp:
            w_cm = jnp.pad(w_cm, ((0, 0), (0, 0), (0, hp_pad - hp)))
            b_cm = jnp.pad(b_cm, ((0, 0), (0, hp_pad - hp)))
        return w_cm.reshape(c_s, 3 * hp_pad), b_cm.reshape(3 * hp_pad)

    # scalar q/k/v linears (no bias in the PyTorch module)
    w_sc = jnp.concatenate([params["w_q"], params["w_k"], params["w_v"]], axis=-1)
    b_sc = jnp.zeros((Dsc,), jnp.float32)
    if Dsc_pad != Dsc:
        w_sc = jnp.pad(w_sc, ((0, 0), (0, Dsc_pad - Dsc)))
        b_sc = jnp.pad(b_sc, (0, Dsc_pad - Dsc))

    w_qp, b_qp = pts_block(params["w_q_pts"], params["b_q_pts"], num_qk_points)
    w_kp, b_kp = pts_block(params["w_k_pts"], params["b_k_pts"], num_qk_points)
    w_vp, b_vp = pts_block(params["w_v_pts"], params["b_v_pts"], num_v_points)

    w_fused = jnp.concatenate([w_sc, w_qp, w_kp, w_vp], axis=-1).astype(jnp.bfloat16)
    b_fused = jnp.concatenate([b_sc, b_qp, b_kp, b_vp])[None, :].astype(jnp.float32)
    return {"w_fused": w_fused, "b_fused": b_fused}


# ---------------------------------------------------------------------------
# Fused projection kernel:
#   local  = act @ W_fused + b_fused          (bf16 MXU, f32 accumulation)
#   scalar = local[:, :Dsc_pad]               (q|k|v scalar projections)
#   pts    = R @ local_point_chunk + t        (per coordinate, f32 rigid apply)
# ---------------------------------------------------------------------------
def fused_ipa_projections(s, rots, trans, w_fused, b_fused, *, num_heads,
                          c_hidden, num_qk_points, num_v_points, tile_m=1024):
    B, N, C = s.shape
    H, Pq, Pv = num_heads, num_qk_points, num_v_points
    HC = H * c_hidden
    Dsc_pad = _round_up(3 * HC, 128)
    HPq, HPv = H * Pq, H * Pv
    HPq_pad, HPv_pad = _round_up(HPq, 128), _round_up(HPv, 128)
    Dq, Dv = 3 * HPq_pad, 3 * HPv_pad
    D_total = Dsc_pad + 2 * Dq + Dv
    assert w_fused.shape == (C, D_total) and b_fused.shape == (1, D_total)

    M = B * N
    M8 = _round_up(M, 8)
    TM = min(_round_up(tile_m, 8), M8)
    # v7x has 2 TensorCores: keep the parallel grid >= 2 steps whenever M allows.
    if M8 // TM < 2 and M8 >= 16:
        TM = _round_up((M8 + 1) // 2, 8)

    phys = _vmem_physical_bytes()

    def footprint(tm):  # double-buffered pipeline footprint estimate (bytes)
        per_step = tm * C * 4 + tm * 12 * 4 + tm * D_total * 4
        return 2 * per_step + 2 * (C * D_total * 2 + D_total * 4)

    while TM > 256 and footprint(TM) > int(phys * 0.55):
        TM = _round_up(TM // 2, 8)
    M_pad = _round_up(M, TM)

    est = footprint(TM)
    vmem_limit = None
    if est > 14 * 1024 * 1024:   # above v5e's ~16 MiB scoped-VMEM default
        vmem_limit = min(int(est * 1.5), int(phys * 3 // 4))  # <=48 MiB on v7x

    act_flat = s.reshape(M, C).astype(jnp.float32)   # f32 in HBM; bf16 cast in-kernel
    rt_flat = jnp.concatenate(
        [rots.reshape(M, 9), trans.reshape(M, 3)], axis=-1).astype(jnp.float32)
    if M_pad != M:
        pad = M_pad - M
        act_flat = jnp.pad(act_flat, ((0, pad), (0, 0)))
        rt_flat = jnp.pad(rt_flat, ((0, pad), (0, 0)))

    def kernel(act_ref, w_ref, b_ref, rt_ref, sc_ref, qp_ref, kp_ref, vp_ref):
        # act_ref: [TM, C] f32 -> bf16 cast on the VPU, hidden under the pipeline
        local = jnp.dot(act_ref[...].astype(jnp.bfloat16), w_ref[...],
                        preferred_element_type=jnp.float32) + b_ref[...]
        sc_ref[...] = local[:, 0:Dsc_pad]

        rt = rt_ref[...]
        r = [rt[:, i:i + 1] for i in range(9)]
        tx, ty, tz = rt[:, 9:10], rt[:, 10:11], rt[:, 11:12]

        def rigid_apply(off, hp_pad, out_ref):
            # NOTE: pad lanes of the point chunks receive the translation value;
            # they are sliced off after the kernel and never consumed.
            lx = local[:, off:off + hp_pad]
            ly = local[:, off + hp_pad:off + 2 * hp_pad]
            lz = local[:, off + 2 * hp_pad:off + 3 * hp_pad]
            out_ref[:, 0:hp_pad] = r[0] * lx + r[1] * ly + r[2] * lz + tx
            out_ref[:, hp_pad:2 * hp_pad] = r[3] * lx + r[4] * ly + r[5] * lz + ty
            out_ref[:, 2 * hp_pad:3 * hp_pad] = r[6] * lx + r[7] * ly + r[8] * lz + tz

        rigid_apply(Dsc_pad, HPq_pad, qp_ref)
        rigid_apply(Dsc_pad + Dq, HPq_pad, kp_ref)
        rigid_apply(Dsc_pad + 2 * Dq, HPv_pad, vp_ref)

    sc, qp, kp, vp = pl.pallas_call(
        kernel,
        out_shape=(
            jax.ShapeDtypeStruct((M_pad, Dsc_pad), jnp.float32),
            jax.ShapeDtypeStruct((M_pad, Dq), jnp.float32),
            jax.ShapeDtypeStruct((M_pad, Dq), jnp.float32),
            jax.ShapeDtypeStruct((M_pad, Dv), jnp.float32),
        ),
        grid_spec=pltpu.PrefetchScalarGridSpec(
            num_scalar_prefetch=0,
            grid=(M_pad // TM,),
            in_specs=[
                pl.BlockSpec((TM, C), lambda i: (i, 0)),
                # constant index_map -> fused weight/bias stay VMEM-resident
                pl.BlockSpec((C, D_total), lambda i: (0, 0)),
                pl.BlockSpec((1, D_total), lambda i: (0, 0)),
                pl.BlockSpec((TM, 12), lambda i: (i, 0)),
            ],
            out_specs=[
                pl.BlockSpec((TM, Dsc_pad), lambda i: (i, 0)),
                pl.BlockSpec((TM, Dq), lambda i: (i, 0)),
                pl.BlockSpec((TM, Dq), lambda i: (i, 0)),
                pl.BlockSpec((TM, Dv), lambda i: (i, 0)),
            ],
        ),
        compiler_params=pltpu.CompilerParams(
            dimension_semantics=("parallel",),   # row grid shards across v7x TCs
            vmem_limit_bytes=vmem_limit,
        ),
    )(act_flat, w_fused, b_fused, rt_flat)

    q_sc = sc[:M, 0:HC].reshape(B, N, H, c_hidden)
    k_sc = sc[:M, HC:2 * HC].reshape(B, N, H, c_hidden)
    v_sc = sc[:M, 2 * HC:3 * HC].reshape(B, N, H, c_hidden)

    def unpad(x, hp, hp_pad, P):
        return x[:M].reshape(M, 3, hp_pad)[:, :, :hp].reshape(B, N, 3, H, P)

    q_pts = unpad(qp, HPq, HPq_pad, Pq)   # coordinate-major [B, N, 3, H, P]
    k_pts = unpad(kp, HPq, HPq_pad, Pq)
    v_pts = unpad(vp, HPv, HPv_pad, Pv)
    return q_sc, k_sc, v_sc, q_pts, k_pts, v_pts


# ---------------------------------------------------------------------------
# InvariantPointAttentionMultimer forward (Pallas-backed fused projections)
# ---------------------------------------------------------------------------
@functools.partial(
    jax.jit,
    static_argnames=("num_heads", "num_qk_points", "num_v_points", "c_hidden",
                     "inf", "eps"))
def ipa_multimer_forward(s, z, rots, trans, mask, params, *, num_heads,
                         num_qk_points, num_v_points, c_hidden, inf=1e5,
                         eps=1e-8):
    B, N, _ = s.shape
    H, Pq, Pv = num_heads, num_qk_points, num_v_points
    c_z = z.shape[-1]

    point_weights = math.sqrt(1.0 / (max(Pq, 1) * 9.0 / 2)) * \
        jnp.logaddexp(params["head_weights"], 0.0)          # softplus(head_weights)

    # One Pallas kernel: scalar q/k/v + global q/k/v points (coordinate-major).
    q_sc, k_sc, v_sc, q_pts, k_pts, v_pts = fused_ipa_projections(
        s, rots, trans, params["w_fused"], params["b_fused"],
        num_heads=H, c_hidden=c_hidden, num_qk_points=Pq, num_v_points=Pv)

    # --- attention logits ----------------------------------------------------
    # point term via ||q||^2 + ||k||^2 - 2 q.k (MXU), no 6-D diff tensor
    qn2 = jnp.sum(q_pts * q_pts, axis=(2, 4))                # [B, N, H]
    kn2 = jnp.sum(k_pts * k_pts, axis=(2, 4))                # [B, N, H]
    cross = jnp.einsum("bqchp,bkchp->bqkh", q_pts, k_pts)    # [B, Nq, Nk, H]
    d2 = qn2[:, :, None, :] + kn2[:, None, :, :] - 2.0 * cross
    a = -0.5 * point_weights * d2

    scalar_weights = math.sqrt(1.0 / max(c_hidden, 1))
    a = a + jnp.einsum("bqhc,bkhc->bqkh", q_sc * scalar_weights, k_sc)
    a = a + (z @ params["w_b"] + params["b_b"])              # pair bias

    square_mask = inf * (mask[:, :, None] * mask[:, None, :] - 1.0)
    a = a + square_mask[..., None]
    a = a * math.sqrt(1.0 / 3)
    a = jax.nn.softmax(a, axis=-2)                           # softmax over keys

    # --- outputs --------------------------------------------------------------
    o = jnp.einsum("bqkh,bkhc->bqhc", a, v_sc).reshape(B, N, H * c_hidden)

    o_pt = jnp.einsum("bqkh,bkchp->bqchp", a, v_pts)         # [B, Nq, 3, H, Pv]
    o_pt = o_pt.reshape(B, N, 3, H * Pv)
    # inverse rigid apply: R^T (p - t), broadcast over H*Pv
    px = o_pt[:, :, 0] - trans[..., 0:1]
    py = o_pt[:, :, 1] - trans[..., 1:2]
    pz = o_pt[:, :, 2] - trans[..., 2:3]
    r = rots
    lx = r[..., 0, 0:1] * px + r[..., 1, 0:1] * py + r[..., 2, 0:1] * pz
    ly = r[..., 0, 1:2] * px + r[..., 1, 1:2] * py + r[..., 2, 1:2] * pz
    lz = r[..., 0, 2:3] * px + r[..., 1, 2:3] * py + r[..., 2, 2:3] * pz
    o_pt_norm = jnp.sqrt(jnp.maximum(lx * lx + ly * ly + lz * lz, eps * eps))

    o_pair = jnp.einsum("bqkh,bqkc->bqhc", a, z).reshape(B, N, H * c_z)

    cat = jnp.concatenate([o, lx, ly, lz, o_pt_norm, o_pair], axis=-1)
    return cat @ params["w_out"] + params["b_out"]


# ---------------------------------------------------------------------------
# Pure-JAX (f32, no Pallas) references that mirror the PyTorch code literally
# ---------------------------------------------------------------------------
def _reference_point_projection(activations, rots, trans, weight, bias, *,
                                no_heads, num_points, is_multimer):
    H, P = no_heads, num_points
    p_local = jnp.einsum("bnc,cd->bnd", activations, weight) + bias
    out_shape = p_local.shape[:-1] + (H, P, 3)
    if is_multimer:
        p_local = p_local.reshape(p_local.shape[:-1] + (H, 3 * P))
    chunk = p_local.shape[-1] // 3
    parts = [p_local[..., i * chunk:(i + 1) * chunk] for i in range(3)]
    p_local = jnp.stack(parts, axis=-1).reshape(out_shape)      # [B, N, H, P, 3]
    return (jnp.einsum("bnij,bnhpj->bnhpi", rots, p_local)
            + trans[:, :, None, None, :])


def _reference_ipa(s, z, rots, trans, mask, params, *, num_heads, num_qk_points,
                   num_v_points, c_hidden, inf=1e5, eps=1e-8):
    B, N, _ = s.shape
    H, Pq, Pv = num_heads, num_qk_points, num_v_points
    c_z = z.shape[-1]

    point_weights = math.sqrt(1.0 / (max(Pq, 1) * 9.0 / 2)) * \
        jnp.logaddexp(params["head_weights"], 0.0)

    q_pts = _reference_point_projection(s, rots, trans, params["w_q_pts"],
                                        params["b_q_pts"], no_heads=H,
                                        num_points=Pq, is_multimer=True)
    k_pts = _reference_point_projection(s, rots, trans, params["w_k_pts"],
                                        params["b_k_pts"], no_heads=H,
                                        num_points=Pq, is_multimer=True)
    diff = q_pts[:, :, None] - k_pts[:, None, :]        # [B, Nq, Nk, H, Pq, 3]
    d2 = jnp.sum(diff * diff, axis=-1)
    a = -0.5 * jnp.sum(d2 * point_weights[..., None], axis=-1)

    scalar_weights = math.sqrt(1.0 / max(c_hidden, 1))
    q = (s @ params["w_q"]).reshape(B, N, H, c_hidden) * scalar_weights
    k = (s @ params["w_k"]).reshape(B, N, H, c_hidden)
    a = a + jnp.einsum("bqhc,bkhc->bqkh", q, k)
    a = a + (z @ params["w_b"] + params["b_b"])
    square_mask = inf * (mask[:, :, None] * mask[:, None, :] - 1.0)
    a = a + square_mask[..., None]
    a = a * math.sqrt(1.0 / 3)
    a = jax.nn.softmax(a, axis=-2)

    v = (s @ params["w_v"]).reshape(B, N, H, c_hidden)
    o = jnp.einsum("bqkh,bkhc->bqhc", a, v).reshape(B, N, H * c_hidden)

    v_pts = _reference_point_projection(s, rots, trans, params["w_v_pts"],
                                        params["b_v_pts"], no_heads=H,
                                        num_points=Pv, is_multimer=True)
    o_pt = jnp.einsum("bqkh,bkhpc->bqhpc", a, v_pts)    # [B, Nq, H, Pv, 3]
    o_pt = o_pt.reshape(B, N, H * Pv, 3)
    p_minus_t = o_pt - trans[:, :, None, :]
    o_pt_local = jnp.einsum("bnji,bnkj->bnki", rots, p_minus_t)   # R^T (p - t)
    o_pt_norm = jnp.sqrt(
        jnp.maximum(jnp.sum(o_pt_local ** 2, axis=-1), eps * eps))
    o_pair = jnp.einsum("bqkh,bqkc->bqhc", a, z).reshape(B, N, H * c_z)
    cat = jnp.concatenate([o, o_pt_local[..., 0], o_pt_local[..., 1],
                           o_pt_local[..., 2], o_pt_norm, o_pair], axis=-1)
    return cat @ params["w_out"] + params["b_out"]


if __name__ == "__main__":
    # Small shapes consistent with the module's forward.
    B, N = 2, 16
    c_s, c_z, c_hidden = 32, 16, 8
    H, Pq, Pv = 4, 4, 8
    inf, eps = 1e5, 1e-8

    key = jax.random.PRNGKey(0)
    ks = jax.random.split(key, 16)

    s = jax.random.normal(ks[0], (B, N, c_s), dtype=jnp.float32)
    z = jax.random.normal(ks[1], (B, N, N, c_z), dtype=jnp.float32) * 0.5
    mask = jnp.ones((B, N), dtype=jnp.float32).at[:, -2:].set(0.0)

    # Proper rigid transforms: rotations from random quaternions + translations.
    quat = jax.random.normal(ks[2], (B, N, 4), dtype=jnp.float32)
    quat = quat / jnp.linalg.norm(quat, axis=-1, keepdims=True)
    qw, qx, qy, qz = quat[..., 0], quat[..., 1], quat[..., 2], quat[..., 3]
    rots = jnp.stack(
        [
            1 - 2 * (qy * qy + qz * qz), 2 * (qx * qy - qw * qz), 2 * (qx * qz + qw * qy),
            2 * (qx * qy + qw * qz), 1 - 2 * (qx * qx + qz * qz), 2 * (qy * qz - qw * qx),
            2 * (qx * qz - qw * qy), 2 * (qy * qz + qw * qx), 1 - 2 * (qx * qx + qy * qy),
        ],
        axis=-1,
    ).reshape(B, N, 3, 3)
    trans = jax.random.normal(ks[3], (B, N, 3), dtype=jnp.float32)

    def lin(k, fan_in, fan_out, scale=None):
        sc = scale if scale is not None else 1.0 / math.sqrt(fan_in)
        return jax.random.normal(k, (fan_in, fan_out), dtype=jnp.float32) * sc

    concat_dim = H * (c_z + c_hidden + Pv * 4)
    params = dict(
        w_q=lin(ks[4], c_s, H * c_hidden),
        w_k=lin(ks[5], c_s, H * c_hidden),
        w_v=lin(ks[6], c_s, H * c_hidden),
        w_q_pts=lin(ks[7], c_s, H * 3 * Pq, 0.05),
        b_q_pts=jax.random.normal(ks[8], (H * 3 * Pq,), jnp.float32) * 0.02,
        w_k_pts=lin(ks[9], c_s, H * 3 * Pq, 0.05),
        b_k_pts=jax.random.normal(ks[10], (H * 3 * Pq,), jnp.float32) * 0.02,
        w_v_pts=lin(ks[11], c_s, H * 3 * Pv, 0.05),
        b_v_pts=jax.random.normal(ks[12], (H * 3 * Pv,), jnp.float32) * 0.02,
        w_b=lin(ks[13], c_z, H),
        b_b=jnp.zeros((H,), jnp.float32),
        head_weights=jnp.full((H,), 0.541324854612918, jnp.float32),  # softplus^-1(1)
        w_out=lin(ks[14], concat_dim, c_s, 0.02),
        b_out=jax.random.normal(ks[15], (c_s,), jnp.float32) * 0.01,
    )

    # One-time weight preparation (outside jit).
    fused = prepare_fused_projection_weights(
        params, c_s=c_s, num_heads=H, c_hidden=c_hidden,
        num_qk_points=Pq, num_v_points=Pv)
    fwd_params = dict(
        w_fused=fused["w_fused"], b_fused=fused["b_fused"],
        w_b=params["w_b"], b_b=params["b_b"],
        head_weights=params["head_weights"],
        w_out=params["w_out"], b_out=params["b_out"],
    )

    # 1) Validate the fused projection kernel (bf16 matmul -> loose tol).
    q_sc, k_sc, v_sc, q_pts_cm, k_pts_cm, v_pts_cm = fused_ipa_projections(
        s, rots, trans, fused["w_fused"], fused["b_fused"],
        num_heads=H, c_hidden=c_hidden, num_qk_points=Pq, num_v_points=Pv)
    q_pts_pallas = jax.block_until_ready(jnp.moveaxis(q_pts_cm, 2, -1))
    q_pts_ref = _reference_point_projection(
        s, rots, trans, params["w_q_pts"], params["b_q_pts"],
        no_heads=H, num_points=Pq, is_multimer=True)
    np.testing.assert_allclose(np.asarray(q_pts_pallas), np.asarray(q_pts_ref),
                               rtol=2e-2, atol=2e-2)
    q_sc_ref = (s @ params["w_q"]).reshape(B, N, H, c_hidden)
    np.testing.assert_allclose(np.asarray(q_sc), np.asarray(q_sc_ref),
                               rtol=2e-2, atol=2e-2)

    # 2) Full InvariantPointAttentionMultimer forward with the fused kernel.
    out = ipa_multimer_forward(
        s, z, rots, trans, mask, fwd_params, num_heads=H, num_qk_points=Pq,
        num_v_points=Pv, c_hidden=c_hidden, inf=inf, eps=eps)
    out = jax.block_until_ready(out)
    ref = _reference_ipa(
        s, z, rots, trans, mask, params, num_heads=H, num_qk_points=Pq,
        num_v_points=Pv, c_hidden=c_hidden, inf=inf, eps=eps)
    np.testing.assert_allclose(np.asarray(out), np.asarray(ref),
                               rtol=5e-2, atol=5e-2)

    print("KERNEL_OK")
</pallas_src>

<mosaic_0001>
module attributes {stable_mosaic.version = 11 : i64} {
  func.func @kernel(%arg0: i32, %arg1: memref<16x32xf32, #tpu.memory_space<vmem>>, %arg2: memref<32x1280xbf16, #tpu.memory_space<vmem>>, %arg3: memref<1x1280xf32, #tpu.memory_space<vmem>>, %arg4: memref<16x12xf32, #tpu.memory_space<vmem>>, %arg5: memref<16x128xf32, #tpu.memory_space<vmem>>, %arg6: memref<16x384xf32, #tpu.memory_space<vmem>>, %arg7: memref<16x384xf32, #tpu.memory_space<vmem>>, %arg8: memref<16x384xf32, #tpu.memory_space<vmem>>) attributes {dimension_semantics = [#tpu.dimension_semantics<parallel>], iteration_bounds = array<i64: 2>, scalar_prefetch = 0 : i64, scratch_operands = 0 : i64, tpu.core_type = #tpu.core_type<tc>, window_params = [{transform_indices = @transform_0, window_bounds = array<i64: 16, 32>}, {pipeline_mode = #tpu.pipeline_mode<synchronous>, transform_indices = @transform_1, window_bounds = array<i64: 32, 1280>}, {pipeline_mode = #tpu.pipeline_mode<synchronous>, transform_indices = @transform_2, window_bounds = array<i64: 1, 1280>}, {transform_indices = @transform_3, window_bounds = array<i64: 16, 12>}, {transform_indices = @transform_4, window_bounds = array<i64: 16, 128>}, {transform_indices = @transform_5, window_bounds = array<i64: 16, 384>}, {transform_indices = @transform_6, window_bounds = array<i64: 16, 384>}, {transform_indices = @transform_7, window_bounds = array<i64: 16, 384>}]} {
    %c0 = arith.constant 0 : index
    %c0_0 = arith.constant 0 : index
    %0 = vector.load %arg1[%c0, %c0_0] : memref<16x32xf32, #tpu.memory_space<vmem>>, vector<16x32xf32>
    %1 = arith.truncf %0 : vector<16x32xf32> to vector<16x32xbf16>
    %c0_1 = arith.constant 0 : index
    %c0_2 = arith.constant 0 : index
    %2 = vector.load %arg2[%c0_1, %c0_2] : memref<32x1280xbf16, #tpu.memory_space<vmem>>, vector<32x1280xbf16>
    %cst = arith.constant dense<0.000000e+00> : vector<16x1280xf32>
    %3 = tpu.matmul %1, %2, %cst {dimension_numbers = #tpu.dot_dimension_numbers<[1], [0], [0], [1], [0, 0, 1, 1], [], []>} : vector<16x32xbf16>, vector<32x1280xbf16>, vector<16x1280xf32> -> vector<16x1280xf32>
    %c0_3 = arith.constant 0 : index
    %c0_4 = arith.constant 0 : index
    %4 = vector.load %arg3[%c0_3, %c0_4] : memref<1x1280xf32, #tpu.memory_space<vmem>>, vector<1x1280xf32>
    %5 = vector.broadcast %4 : vector<1x1280xf32> to vector<16x1280xf32>
    %6 = arith.addf %3, %5 : vector<16x1280xf32>
    %7 = vector.extract_strided_slice %6 {offsets = [0, 0], sizes = [16, 128], strides = [1, 1]} : vector<16x1280xf32> to vector<16x128xf32>
    %c0_5 = arith.constant 0 : index
    %c0_6 = arith.constant 0 : index
    %8 = vector.load %arg5[%c0_5, %c0_6] : memref<16x128xf32, #tpu.memory_space<vmem>>, vector<16x128xf32>
    tpu.vector_store %arg5[%c0_5, %c0_6], %7 {strides = array<i32>} : memref<16x128xf32, #tpu.memory_space<vmem>>, vector<16x128xf32>,
    %c0_7 = arith.constant 0 : index
    %c0_8 = arith.constant 0 : index
    %9 = vector.load %arg4[%c0_7, %c0_8] : memref<16x12xf32, #tpu.memory_space<vmem>>, vector<16x12xf32>
    %10 = vector.extract_strided_slice %9 {offsets = [0, 0], sizes = [16, 1], strides = [1, 1]} : vector<16x12xf32> to vector<16x1xf32>
    %11 = vector.extract_strided_slice %9 {offsets = [0, 1], sizes = [16, 1], strides = [1, 1]} : vector<16x12xf32> to vector<16x1xf32>
    %12 = vector.extract_strided_slice %9 {offsets = [0, 2], sizes = [16, 1], strides = [1, 1]} : vector<16x12xf32> to vector<16x1xf32>
    %13 = vector.extract_strided_slice %9 {offsets = [0, 3], sizes = [16, 1], strides = [1, 1]} : vector<16x12xf32> to vector<16x1xf32>
    %14 = vector.extract_strided_slice %9 {offsets = [0, 4], sizes = [16, 1], strides = [1, 1]} : vector<16x12xf32> to vector<16x1xf32>
    %15 = vector.extract_strided_slice %9 {offsets = [0, 5], sizes = [16, 1], strides = [1, 1]} : vector<16x12xf32> to vector<16x1xf32>
    %16 = vector.extract_strided_slice %9 {offsets = [0, 6], sizes = [16, 1], strides = [1, 1]} : vector<16x12xf32> to vector<16x1xf32>
    %17 = vector.extract_strided_slice %9 {offsets = [0, 7], sizes = [16, 1], strides = [1, 1]} : vector<16x12xf32> to vector<16x1xf32>
    %18 = vector.extract_strided_slice %9 {offsets = [0, 8], sizes = [16, 1], strides = [1, 1]} : vector<16x12xf32> to vector<16x1xf32>
    %19 = vector.extract_strided_slice %9 {offsets = [0, 9], sizes = [16, 1], strides = [1, 1]} : vector<16x12xf32> to vector<16x1xf32>
    %20 = vector.extract_strided_slice %9 {offsets = [0, 10], sizes = [16, 1], strides = [1, 1]} : vector<16x12xf32> to vector<16x1xf32>
    %21 = vector.extract_strided_slice %9 {offsets = [0, 11], sizes = [16, 1], strides = [1, 1]} : vector<16x12xf32> to vector<16x1xf32>
    %22 = vector.extract_strided_slice %6 {offsets = [0, 128], sizes = [16, 128], strides = [1, 1]} : vector<16x1280xf32> to vector<16x128xf32>
    %23 = vector.extract_strided_slice %6 {offsets = [0, 256], sizes = [16, 128], strides = [1, 1]} : vector<16x1280xf32> to vector<16x128xf32>
    %24 = vector.extract_strided_slice %6 {offsets = [0, 384], sizes = [16, 128], strides = [1, 1]} : vector<16x1280xf32> to vector<16x128xf32>
    %25 = vector.broadcast %10 : vector<16x1xf32> to vector<16x128xf32>
    %26 = arith.mulf %25, %22 : vector<16x128xf32>
    %27 = vector.broadcast %11 : vector<16x1xf32> to vector<16x128xf32>
    %28 = arith.mulf %27, %23 : vector<16x128xf32>
    %29 = arith.addf %26, %28 : vector<16x128xf32>
    %30 = vector.broadcast %12 : vector<16x1xf32> to vector<16x128xf32>
    %31 = arith.mulf %30, %24 : vector<16x128xf32>
    %32 = arith.addf %29, %31 : vector<16x128xf32>
    %33 = vector.broadcast %19 : vector<16x1xf32> to vector<16x128xf32>
    %34 = arith.addf %32, %33 : vector<16x128xf32>
    %c0_9 = arith.constant 0 : index
    %c0_10 = arith.constant 0 : index
    %35 = vector.load %arg6[%c0_9, %c0_10] : memref<16x384xf32, #tpu.memory_space<vmem>>, vector<16x128xf32>
    tpu.vector_store %arg6[%c0_9, %c0_10], %34 {strides = array<i32>} : memref<16x384xf32, #tpu.memory_space<vmem>>, vector<16x128xf32>,
    %36 = vector.broadcast %13 : vector<16x1xf32> to vector<16x128xf32>
    %37 = arith.mulf %36, %22 : vector<16x128xf32>
    %38 = vector.broadcast %14 : vector<16x1xf32> to vector<16x128xf32>
    %39 = arith.mulf %38, %23 : vector<16x128xf32>
    %40 = arith.addf %37, %39 : vector<16x128xf32>
    %41 = vector.broadcast %15 : vector<16x1xf32> to vector<16x128xf32>
    %42 = arith.mulf %41, %24 : vector<16x128xf32>
    %43 = arith.addf %40, %42 : vector<16x128xf32>
    %44 = vector.broadcast %20 : vector<16x1xf32> to vector<16x128xf32>
    %45 = arith.addf %43, %44 : vector<16x128xf32>
    %c0_11 = arith.constant 0 : index
    %c128 = arith.constant 128 : index
    %46 = vector.load %arg6[%c0_11, %c128] : memref<16x384xf32, #tpu.memory_space<vmem>>, vector<16x128xf32>
    tpu.vector_store %arg6[%c0_11, %c128], %45 {strides = array<i32>} : memref<16x384xf32, #tpu.memory_space<vmem>>, vector<16x128xf32>,
    %47 = vector.broadcast %16 : vector<16x1xf32> to vector<16x128xf32>
    %48 = arith.mulf %47, %22 : vector<16x128xf32>
    %49 = vector.broadcast %17 : vector<16x1xf32> to vector<16x128xf32>
    %50 = arith.mulf %49, %23 : vector<16x128xf32>
    %51 = arith.addf %48, %50 : vector<16x128xf32>
    %52 = vector.broadcast %18 : vector<16x1xf32> to vector<16x128xf32>
    %53 = arith.mulf %52, %24 : vector<16x128xf32>
    %54 = arith.addf %51, %53 : vector<16x128xf32>
    %55 = vector.broadcast %21 : vector<16x1xf32> to vector<16x128xf32>
    %56 = arith.addf %54, %55 : vector<16x128xf32>
    %c0_12 = arith.constant 0 : index
    %c256 = arith.constant 256 : index
    %57 = vector.load %arg6[%c0_12, %c256] : memref<16x384xf32, #tpu.memory_space<vmem>>, vector<16x128xf32>
    tpu.vector_store %arg6[%c0_12, %c256], %56 {strides = array<i32>} : memref<16x384xf32, #tpu.memory_space<vmem>>, vector<16x128xf32>,
    %58 = vector.extract_strided_slice %6 {offsets = [0, 512], sizes = [16, 128], strides = [1, 1]} : vector<16x1280xf32> to vector<16x128xf32>
    %59 = vector.extract_strided_slice %6 {offsets = [0, 640], sizes = [16, 128], strides = [1, 1]} : vector<16x1280xf32> to vector<16x128xf32>
    %60 = vector.extract_strided_slice %6 {offsets = [0, 768], sizes = [16, 128], strides = [1, 1]} : vector<16x1280xf32> to vector<16x128xf32>
    %61 = vector.broadcast %10 : vector<16x1xf32> to vector<16x128xf32>
    %62 = arith.mulf %61, %58 : vector<16x128xf32>
    %63 = vector.broadcast %11 : vector<16x1xf32> to vector<16x128xf32>
    %64 = arith.mulf %63, %59 : vector<16x128xf32>
    %65 = arith.addf %62, %64 : vector<16x128xf32>
    %66 = vector.broadcast %12 : vector<16x1xf32> to vector<16x128xf32>
    %67 = arith.mulf %66, %60 : vector<16x128xf32>
    %68 = arith.addf %65, %67 : vector<16x128xf32>
    %69 = vector.broadcast %19 : vector<16x1xf32> to vector<16x128xf32>
    %70 = arith.addf %68, %69 : vector<16x128xf32>
    %c0_13 = arith.constant 0 : index
    %c0_14 = arith.constant 0 : index
    %71 = vector.load %arg7[%c0_13, %c0_14] : memref<16x384xf32, #tpu.memory_space<vmem>>, vector<16x128xf32>
    tpu.vector_store %arg7[%c0_13, %c0_14], %70 {strides = array<i32>} : memref<16x384xf32, #tpu.memory_space<vmem>>, vector<16x128xf32>,
    %72 = vector.broadcast %13 : vector<16x1xf32> to vector<16x128xf32>
    %73 = arith.mulf %72, %58 : vector<16x128xf32>
    %74 = vector.broadcast %14 : vector<16x1xf32> to vector<16x128xf32>
    %75 = arith.mulf %74, %59 : vector<16x128xf32>
    %76 = arith.addf %73, %75 : vector<16x128xf32>
    %77 = vector.broadcast %15 : vector<16x1xf32> to vector<16x128xf32>
    %78 = arith.mulf %77, %60 : vector<16x128xf32>
    %79 = arith.addf %76, %78 : vector<16x128xf32>
    %80 = vector.broadcast %20 : vector<16x1xf32> to vector<16x128xf32>
    %81 = arith.addf %79, %80 : vector<16x128xf32>
    %c0_15 = arith.constant 0 : index
    %c128_16 = arith.constant 128 : index
    %82 = vector.load %arg7[%c0_15, %c128_16] : memref<16x384xf32, #tpu.memory_space<vmem>>, vector<16x128xf32>
    tpu.vector_store %arg7[%c0_15, %c128_16], %81 {strides = array<i32>} : memref<16x384xf32, #tpu.memory_space<vmem>>, vector<16x128xf32>,
    %83 = vector.broadcast %16 : vector<16x1xf32> to vector<16x128xf32>
    %84 = arith.mulf %83, %58 : vector<16x128xf32>
    %85 = vector.broadcast %17 : vector<16x1xf32> to vector<16x128xf32>
    %86 = arith.mulf %85, %59 : vector<16x128xf32>
    %87 = arith.addf %84, %86 : vector<16x128xf32>
    %88 = vector.broadcast %18 : vector<16x1xf32> to vector<16x128xf32>
    %89 = arith.mulf %88, %60 : vector<16x128xf32>
    %90 = arith.addf %87, %89 : vector<16x128xf32>
    %91 = vector.broadcast %21 : vector<16x1xf32> to vector<16x128xf32>
    %92 = arith.addf %90, %91 : vector<16x128xf32>
    %c0_17 = arith.constant 0 : index
    %c256_18 = arith.constant 256 : index
    %93 = vector.load %arg7[%c0_17, %c256_18] : memref<16x384xf32, #tpu.memory_space<vmem>>, vector<16x128xf32>
    tpu.vector_store %arg7[%c0_17, %c256_18], %92 {strides = array<i32>} : memref<16x384xf32, #tpu.memory_space<vmem>>, vector<16x128xf32>,
    %94 = vector.extract_strided_slice %6 {offsets = [0, 896], sizes = [16, 128], strides = [1, 1]} : vector<16x1280xf32> to vector<16x128xf32>
    %95 = vector.extract_strided_slice %6 {offsets = [0, 1024], sizes = [16, 128], strides = [1, 1]} : vector<16x1280xf32> to vector<16x128xf32>
    %96 = vector.extract_strided_slice %6 {offsets = [0, 1152], sizes = [16, 128], strides = [1, 1]} : vector<16x1280xf32> to vector<16x128xf32>
    %97 = vector.broadcast %10 : vector<16x1xf32> to vector<16x128xf32>
    %98 = arith.mulf %97, %94 : vector<16x128xf32>
    %99 = vector.broadcast %11 : vector<16x1xf32> to vector<16x128xf32>
    %100 = arith.mulf %99, %95 : vector<16x128xf32>
    %101 = arith.addf %98, %100 : vector<16x128xf32>
    %102 = vector.broadcast %12 : vector<16x1xf32> to vector<16x128xf32>
    %103 = arith.mulf %102, %96 : vector<16x128xf32>
    %104 = arith.addf %101, %103 : vector<16x128xf32>
    %105 = vector.broadcast %19 : vector<16x1xf32> to vector<16x128xf32>
    %106 = arith.addf %104, %105 : vector<16x128xf32>
    %c0_19 = arith.constant 0 : index
    %c0_20 = arith.constant 0 : index
    %107 = vector.load %arg8[%c0_19, %c0_20] : memref<16x384xf32, #tpu.memory_space<vmem>>, vector<16x128xf32>
    tpu.vector_store %arg8[%c0_19, %c0_20], %106 {strides = array<i32>} : memref<16x384xf32, #tpu.memory_space<vmem>>, vector<16x128xf32>,
    %108 = vector.broadcast %13 : vector<16x1xf32> to vector<16x128xf32>
    %109 = arith.mulf %108, %94 : vector<16x128xf32>
    %110 = vector.broadcast %14 : vector<16x1xf32> to vector<16x128xf32>
    %111 = arith.mulf %110, %95 : vector<16x128xf32>
    %112 = arith.addf %109, %111 : vector<16x128xf32>
    %113 = vector.broadcast %15 : vector<16x1xf32> to vector<16x128xf32>
    %114 = arith.mulf %113, %96 : vector<16x128xf32>
    %115 = arith.addf %112, %114 : vector<16x128xf32>
    %116 = vector.broadcast %20 : vector<16x1xf32> to vector<16x128xf32>
    %117 = arith.addf %115, %116 : vector<16x128xf32>
    %c0_21 = arith.constant 0 : index
    %c128_22 = arith.constant 128 : index
    %118 = vector.load %arg8[%c0_21, %c128_22] : memref<16x384xf32, #tpu.memory_space<vmem>>, vector<16x128xf32>
    tpu.vector_store %arg8[%c0_21, %c128_22], %117 {strides = array<i32>} : memref<16x384xf32, #tpu.memory_space<vmem>>, vector<16x128xf32>,
    %119 = vector.broadcast %16 : vector<16x1xf32> to vector<16x128xf32>
    %120 = arith.mulf %119, %94 : vector<16x128xf32>
    %121 = vector.broadcast %17 : vector<16x1xf32> to vector<16x128xf32>
    %122 = arith.mulf %121, %95 : vector<16x128xf32>
    %123 = arith.addf %120, %122 : vector<16x128xf32>
    %124 = vector.broadcast %18 : vector<16x1xf32> to vector<16x128xf32>
    %125 = arith.mulf %124, %96 : vector<16x128xf32>
    %126 = arith.addf %123, %125 : vector<16x128xf32>
    %127 = vector.broadcast %21 : vector<16x1xf32> to vector<16x128xf32>
    %128 = arith.addf %126, %127 : vector<16x128xf32>
    %c0_23 = arith.constant 0 : index
    %c256_24 = arith.constant 256 : index
    %129 = vector.load %arg8[%c0_23, %c256_24] : memref<16x384xf32, #tpu.memory_space<vmem>>, vector<16x128xf32>
    tpu.vector_store %arg8[%c0_23, %c256_24], %128 {strides = array<i32>} : memref<16x384xf32, #tpu.memory_space<vmem>>, vector<16x128xf32>,
    return
  }
  func.func @transform_0(%arg0: i32) -> (i32, i32) {
    %c0_i32 = arith.constant 0 : i32
    %c0_i32_0 = arith.constant 0 : i32
    return %arg0, %c0_i32 : i32, i32
  }
  func.func @transform_1(%arg0: i32) -> (i32, i32) {
    %c0_i32 = arith.constant 0 : i32
    %c0_i32_0 = arith.constant 0 : i32
    %c0_i32_1 = arith.constant 0 : i32
    return %c0_i32, %c0_i32_0 : i32, i32
  }
  func.func @transform_2(%arg0: i32) -> (i32, i32) {
    %c0_i32 = arith.constant 0 : i32
    %c0_i32_0 = arith.constant 0 : i32
    %c0_i32_1 = arith.constant 0 : i32
    return %c0_i32, %c0_i32_0 : i32, i32
  }
  func.func @transform_3(%arg0: i32) -> (i32, i32) {
    %c0_i32 = arith.constant 0 : i32
    %c0_i32_0 = arith.constant 0 : i32
    return %arg0, %c0_i32 : i32, i32
  }
  func.func @transform_4(%arg0: i32) -> (i32, i32) {
    %c0_i32 = arith.constant 0 : i32
    %c0_i32_0 = arith.constant 0 : i32
    return %arg0, %c0_i32 : i32, i32
  }
  func.func @transform_5(%arg0: i32) -> (i32, i32) {
    %c0_i32 = arith.constant 0 : i32
    %c0_i32_0 = arith.constant 0 : i32
    return %arg0, %c0_i32 : i32, i32
  }
  func.func @transform_6(%arg0: i32) -> (i32, i32) {
    %c0_i32 = arith.constant 0 : i32
    %c0_i32_0 = arith.constant 0 : i32
    return %arg0, %c0_i32 : i32, i32
  }
  func.func @transform_7(%arg0: i32) -> (i32, i32) {
    %c0_i32 = arith.constant 0 : i32
    %c0_i32_0 = arith.constant 0 : i32
    return %arg0, %c0_i32 : i32, i32
  }
}

</mosaic_0001>

<bundles_post_ra>
// kernel: tpu_custom_call.1
= control target key start
LH: loop header
LB: loop body
LE: loop exit
PB: predicated region body
PF: predicated region fallthrough
CT: control target
= control target key end

     0   :  { %13 = vsyncpa [#allocation3], 0  ;;  %s2167_s0 = inlined_call_operand.vmem [shape: f32[32,32], index: 0, kind: input, shape index: {}]   ;;  %s2168_s1 = inlined_call_operand.hbm [shape: bf16[32,1280], index: 1, kind: input, shape index: {}]   ;;  %s2169_s2 = inlined_call_operand.vmem [shape: f32[1,1280], index: 2, kind: input, shape index: {}]   ;;  %s2170_s3 = inlined_call_operand.vmem [shape: f32[32,12], index: 3, kind: input, shape index: {}]   ;;  %s2171_s4 = inlined_call_operand.hbm [shape: f32[32,128], index: 4, kind: output, shape index: {0}]   ;;  %s2172_s5 = inlined_call_operand.hbm [shape: f32[32,384], index: 5, kind: output, shape index: {1}]   ;;  %s2173_s6 = inlined_call_operand.hbm [shape: f32[32,384], index: 6, kind: output, shape index: {2}]   ;;  %s2174_s7 = inlined_call_operand.hbm [shape: f32[32,384], index: 7, kind: output, shape index: {3}]  }
   0x1   :  { %14 = vsyncpa [#allocation4], 0 }
   0x2   :  { %16 = vsyncpa [#allocation4 + $0x1], 0 }
   0x3   :  { %17 = vsyncpa [#allocation7], 0 }
   0x4   :  { %19 = vsyncpa [#allocation7 + $0x1], 0 }
   0x5   :  { %20 = vsyncpa [#allocation10], 0 }
   0x6   :  { %22 = vsyncpa [#allocation10 + $0x1], 0  ;;  %s1670_s24 = smov 0   ;;  %s1672_s25 = smov 0  }
   0x7   :  { %s1674_s26 = smov 0   ;;  %s1676_s27 = smov 0  }
   0x8 LB: > { %s1691_s28 = sadd.s32 4294967295, %s1605_s27   ;;  %s2178_s29 = sadd.s32 4294967294, %s1605_s27   ;;  %s1605_s27 = sphi %s1676_s27, %s2196_s27   ;;  %s1601_s26 = sphi %s1674_s26, %s2195_s26   ;;  %s1597_s25 = sphi %s1672_s25, %s2194_s25   ;;  %s1593_s24 = sphi %s1670_s24, %s2193_s24  }
   0x9   : > { %s1695_s30 = sadd.s32 1, %s1605_s27   ;;  %s129_s8 = sadd.s32 1, %s1601_s26 }
   0xa   : > { %s126_s9 = ssub.s32 %s1605_s27, %s1695_s30  ;;  %p139_p0 = scmp.ne.s32.totalorder %s1601_s26, %s1597_s25 }
   0xb   : > { %p127_p1 = scmp.eq.s32.totalorder %s126_s9, 0  ;;  %p140_p2 = scmp.eq.s32.totalorder %s1691_s28, 1 }
   0xc   : > { %p145_p3 = scmp.ne.s32.totalorder %s1597_s25, %s1593_s24  ;;  %p146_p4 = scmp.eq.s32.totalorder %s2178_s29, 1 }
   0xd   : > { %s1708_s10 = scalar_select %p127_p1, %s1601_s26, %s129_s8  }
   0xe   : > { %p1710_p5 = por %p140_p2, %p139_p0  ;;  %p1714_p6 = por %p146_p4, %p145_p3 }
   0xf   : > { %p1233_p7 = scmp.ge.s32.totalorder %s1605_s27, 1  ;;  %p231_p8 = scmp.lt.s32.totalorder %s1605_s27, 3 }
  0x10   : > { %s2181_s11 = scalar_select %p1710_p5, 1, 0 }
  0x11   : > { %s2182_s12 = scalar_select %p1714_p6, 1, 0 }
  0x12   : > { %p2175_p9 = scmp.eq.s32.totalorder %s1691_s28, 0  ;;  %p1721_p10 = pnand %p1233_p7, %p231_p8 }
  0x13   : > { %s1607_s14 = smov [#allocation2]   ;;  %s1419_s19 = scalar_lea.hbm %s2168_s1, 2560 }
  0x14   : > { %s2183_s13 = scalar_select %p1721_p10, 1, 0 }
  0x15   : > { %s243_s15 = sshll.u32 %s1607_s14, 4  ;;  %p1299_p11 = pneg %p1721_p10  ;;  %s244_s15 = int_to_ptr.vmem [resolvable:$true] %s243_s15 }
  0x16   : > { %p1420_p13 = scmp.ne.s32.totalorder %s2168_s1, %s1419_s19  ;;  %p1426_p3 = scmp.lt.u32.totalorder %s1419_s19, %s2168_s1 }
  0x17   : > { %p1729_p12 = pnand %p2175_p9, %p1299_p11 }
  0x19   : > { %p1421_p0 = pneg %p1729_p12 }
  0x1b   : > { %p1422_p1 = pnand %p1421_p0, %p1420_p13 }
  0x1d   : > { %p1423_p2 = pneg %p1422_p1 }
  0x1f   : > { %p1428_p4 = pnand %p1426_p3, %p1423_p2 }
  0x21   : > { %1431 = shalt.err (!%p1428_p4)
}
  0x22   : > { %s1432_s8 = scalar_lea.vmem %s244_s15, 2560  ;;  %p1440_p9 = scmp.lt.s32.totalorder %s244_s15, %s244_s15 }
  0x23   : > { %p1433_p7 = scmp.ne.s32.totalorder %s244_s15, %s1432_s8  ;;  %p1441_p6 = scmp.lt.s32.totalorder %s1432_s8, %s1432_s8 }
  0x25   : > { %p1435_p8 = pnand %p1433_p7, %p1421_p0  ;;  %p1442_p5 = por %p1441_p6, %p1440_p9 }
  0x27   : > { %p1436_p11 = pneg %p1435_p8 }
  0x29   : > { %p1443_p10 = pnand %p1442_p5, %p1436_p11 }
  0x2b   : > { %1446 = shalt.err (!%p1443_p10)
}
  0x2c   : > { %s1608_s9 = smov 640   ;;  %s1609_s14 = smov 40  }
  0x2d   : > { %1302 = dma.hbm_to_vmem [thread:$0]  (!%p1729_p12), %s2168_s1, 2560, %s244_s15, [#allocation3], %s1608_s9, %s1608_s9, %s1609_s14  }
  0x2e   : > { %p2185_p13 = scmp.ne.s32.totalorder %s2183_s13, 0 }
  0x2f   : > { %p2186_p1 = scmp.eq.s32.totalorder (!%p2185_p13), %s1691_s28, 0 }
  0x30   : > { %280 = sbr.rel (%p2185_p13) target bundleno = 387 (0x183), region = 36 }
  0x37   : > { %1576 = dma.done.wait (%p2186_p1), [#allocation3], 2560   ;;  %p2187_p0 = pmov %p2186_p1 }
  0x38   : > { %s1239_s19 = sshll.u32 %s1691_s28, 1  ;;  %v1610_v0 = vmov 0   ;;  %v1611_v1 = vmov 1   ;;  %v1389_v2 = vld [vmem:[#allocation2 + $0x4] ss:$40 sps:$4 sm:$0xff]   ;;  %vm526_vm0 = vcmask 261120   ;;  %v376_v51 = vlaneseq }
  0x39   : > { %1578 = vsyncadd (%p2187_p0), [#allocation3], 4294964736  ;;  %562 = vmatprep.mubr.bf16.mxu0 %v1610_v0  ;;  %605 = vmatprep.mubr.bf16.mxu1 %v1610_v0  ;;  %p333_p5 = scmp.lt.s32.totalorder %s1239_s19, 3  ;;  %v1391_v3 = vld [vmem:[#allocation2 + $0xc] ss:$40 sps:$4 sm:$0xff]   ;;  %v1612_v26 = vmov 2  }
  0x3a   : > { %1371 = vset.pattern.permute.xlu1 %v1611_v1  ;;  %1370 = vset.pattern.permute.xlu0 %v1610_v0  ;;  %v1393_v4 = vld [vmem:[#allocation2] ss:$40 sps:$4 sm:$0xff]   ;;  %v1395_v6 = vld [vmem:[#allocation2 + $0x54] ss:$40 sps:$4 sm:$0xff]   ;;  %v1399_v8 = vld [vmem:[#allocation2 + $0x50] ss:$40 sps:$4 sm:$0xff]  }
  0x3b   : > { %s2198_s19 = smov (!%p333_p5, %s1239_s19), 3  ;;  %530 = vmatprep.subr.bf16.mxu0 %v1389_v2  ;;  %v1394_v5 = vld [vmem:[#allocation2 + $0x8] ss:$40 sps:$4 sm:$0xff]   ;;  %573 = vmatprep.subr.bf16.mxu1 %v1391_v3  ;;  %v1397_v7 = vld [vmem:[#allocation2 + $0x5c] ss:$40 sps:$4 sm:$0xff]   ;;  %v1613_v28 = vmov 3  }
  0x3c   : > { %s1240_s13 = sshll.u32 %s2198_s19, 3  ;;  %531 = vmatpush1.bf16.msra.mxu0 %v1393_v4  ;;  %574 = vmatpush1.bf16.msra.mxu1 %v1394_v5  ;;  %v1400_v9 = vld [vmem:[#allocation2 + $0x58] ss:$40 sps:$4 sm:$0xff]   ;;  %v1403_v15 = vld [vmem:[#allocation2 + $0x14] ss:$40 sps:$4 sm:$0xff]   ;;  %v1614_v29 = vmov 4  }
  0x3d   : > { %s336_s20 = scalar_lea.vmem %s2167_s0, %s1240_s13  ;;  %s342_s23 = scalar_lea.vmem %s2170_s3, %s1240_s13  ;;  %532 = vmatprep.subr.bf16.mxu0 %v1395_v6  ;;  %575 = vmatprep.subr.bf16.mxu1 %v1397_v7  ;;  %v1401_v14 = vld [vmem:[#allocation2 + $0x10] ss:$40 sps:$4 sm:$0xff]   ;;  %v1406_v17 = vld [vmem:[#allocation2 + $0x1c] ss:$40 sps:$4 sm:$0xff]   ;;  %v1407_v20 = vld [vmem:[#allocation2 + $0x60] ss:$40 sps:$4 sm:$0xff]  }
  0x3e   : > { %v349_v10 = vld [vmem:[%s336_s20] sm:$0xff]  ;;  %v350_v11 = vld [vmem:[%s336_s20 + $0x8] sm:$0xff]  ;;  %v1418_v25 = vld [vmem:[#allocation2 + $0x74] ss:$40 sps:$4 sm:$0xff]   ;;  %v1615_v30 = vmov 6   ;;  %v1616_v31 = vmov 7  }
  0x3f   : > { %v1765_v12 = vld [vmem:[%s342_s23] sm:$0xff]  ;;  %v351_v13 = vpack.c.bf16 %v350_v11, %v349_v10  ;;  %v1769_v18 = vld [vmem:[%s342_s23 + $0x8] sm:$0xff]  ;;  %v1416_v27 = vld [vmem:[#allocation2 + $0x70] ss:$40 sps:$4 sm:$0xff]   ;;  %v1617_v32 = vmov 8   ;;  %v1618_v33 = vmov 9  }
  0x40   : > { %762 = vperm.xlu1 %1371, %v1765_v12   ;;  %751 = vperm.xlu0 %1370, %v1765_v12   ;;  %v1404_v16 = vld [vmem:[#allocation2 + $0x18] ss:$40 sps:$4 sm:$0xff]   ;;  %v1409_v19 = vld [vmem:[#allocation2 + $0x64] ss:$40 sps:$4 sm:$0xff]   ;;  %v1410_v22 = vld [vmem:[#allocation2 + $0x68] ss:$40 sps:$4 sm:$0xff]  }
  0x41   : > { %533 = vmatpush1.bf16.msra.mxu0 %v1399_v8  ;;  %576 = vmatpush1.bf16.msra.mxu1 %v1400_v9  ;;  %v1412_v21 = vld [vmem:[#allocation2 + $0x6c] ss:$40 sps:$4 sm:$0xff]   ;;  %v1413_v24 = vld [vmem:[#allocation2 + $0x20] ss:$40 sps:$4 sm:$0xff]   ;;  %v1619_v34 = vmov 5   ;;  %v1620_v35 = vmov 11  }
  0x42   : > { %616 = vmatprep.subr.bf16.mxu0 %v1403_v15  ;;  %659 = vmatprep.subr.bf16.mxu1 %v1406_v17  ;;  %v1415_v23 = vld [vmem:[#allocation2 + $0x24] ss:$40 sps:$4 sm:$0xff]   ;;  %v1621_v36 = vmov 10   ;;  %v377_v54 = vshrl.u32 %v376_v51, 7  ;;  %s1834_s8 = sand.u32 1, %s1597_s25   ;;  %s1282_s16 = sshll.u32 %s1691_s28, 8 }
  0x43   : > { %s1238_s9 = sshll.u32 %s1834_s8, 4  ;;  %v372_v59 = vld [vmem:[%s2169_s2] sm:$0xff]  ;;  %v373_v8 = vld [vmem:[%s2169_s2 + $0x8] sm:$0x3]  ;;  %s1872_s22 = scalar_lea.hbm %s2171_s4, %s1282_s16 }
  0x44   : > { %1263 = vmatmul.mubr.msk.bf16.vlgmr.msra.gmra.mrb[0].mxu0 %vm526_vm0, %v351_v13  ;;  %1264 = vmatmul.mubr.msk.bf16.vlgmr.msra.gmra.mrb[0].mxu1 %vm526_vm0, %v351_v13  ;;  %v378_v56 = vsub.s32 0, %v377_v54  ;;  %v386_v57 = vsub.s32 2, %v377_v54  ;;  %v382_v60 = vsub.s32 1, %v377_v54  ;;  %v390_v61 = vsub.s32 3, %v377_v54  ;;  %s1844_s18 = scalar_lea.vmem [#allocation5], %s1238_s9  ;;  %s1883_s23 = smul.u32 48, %s1834_s8 }
  0x45   : > { %617 = vmatpush1.bf16.msra.mxu0 %v1401_v14  ;;  %660 = vmatpush1.bf16.msra.mxu1 %v1404_v16  ;;  %v394_v62 = vsub.s32 4, %v377_v54  ;;  %v402_v63 = vsub.s32 6, %v377_v54  ;;  %v398_v2 = vsub.s32 5, %v377_v54  ;;  %v406_v3 = vsub.s32 7, %v377_v54  ;;  %s1002_s19 = sshll.u32 %s1844_s18, 4  ;;  %s974_s9 = scalar_lea.sflag [#allocation4], %s1834_s8  ;;  %s1859_s19 = int_to_ptr.vmem [resolvable:$true] %s1002_s19 }
  0x46   : > { %618 = vmatprep.subr.bf16.mxu0 %v1409_v19  ;;  %661 = vmatprep.subr.bf16.mxu1 %v1412_v21  ;;  %v387_v1 = vrot.slane %v372_v59, %v386_v57  ;;  %v383_v4 = vrot.slane %v372_v59, %v382_v60  ;;  %v391_v5 = vrot.slane %v372_v59, %v390_v61  ;;  %s1447_s14 = scalar_lea.vmem %s1859_s19, 256  ;;  %p2188_p9 = scmp.ne.s32.totalorder %s2181_s11, 0 }
  0x47   : > { %648 = vmatprep.mubr.bf16.mxu0 %v1610_v0  ;;  %691 = vmatprep.mubr.bf16.mxu1 %v1610_v0  ;;  %v1855_v11 = vrot.slane %v372_v59, %v394_v62  ;;  %v1861_v17 = vrot.slane %v372_v59, %v398_v2  ;;  %p1448_p6 = scmp.ne.s32.totalorder %s1859_s19, %s1447_s14  ;;  %s1622_s17 = smov [#allocation5]  }
  0x48   : > { %766 = vperm.xlu1 %1371, %v1769_v18   ;;  %756 = vperm.xlu0 %1370, %v1769_v18   ;;  %s1451_s13 = sshll.u32 %s1622_s17, 4  ;;  %s1452_s13 = int_to_ptr.vmem [resolvable:$false] %s1451_s13 }
  0x49   : > { %619 = vmatpush1.bf16.msra.mxu0 %v1407_v20  ;;  %662 = vmatpush1.bf16.msra.mxu1 %v1410_v22  ;;  %p1449_p10 = pnand %p1448_p6, %p2188_p9  ;;  %s1453_s15 = scalar_lea.vmem %s1452_s13, 512 }
  0x4a   : > { %702 = vmatprep.subr.bf16.mxu0 %v1415_v23  ;;  %v1865_v23 = vrot.slane %v373_v8, %v378_v56  ;;  %p1454_p2 = scmp.lt.s32.totalorder %s1859_s19, %s1452_s13  ;;  %p1455_p3 = scmp.lt.s32.totalorder %s1453_s15, %s1447_s14 }
  0x4b   : > { %p1450_p12 = pneg %p1449_p10 }
  0x4c   : > { %1265 = vmatmul.mubr.msk.bf16.vlgmr.msra.gmra.mrb[4].mxu0 %vm526_vm0, %v351_v13  ;;  %1373 = vset.pattern.permute.xlu1 %v1612_v26  ;;  %p1456_p4 = por %p1455_p3, %p1454_p2 }
  0x4d   : > { %1266 = vmatmul.mubr.msk.bf16.vlgmr.msra.gmra.mrb[4].mxu1 %vm526_vm0, %v351_v13  ;;  %703 = vmatpush1.bf16.msra.mxu0 %v1413_v24  ;;  %v1867_v24 = vrot.slane %v373_v8, %v382_v60 }
  0x4e   : > { %704 = vmatprep.subr.bf16.mxu0 %v1418_v25  ;;  %734 = vmatprep.mubr.bf16.mxu0 %v1610_v0  ;;  %v379_v0 = vrot.slane %v372_v59, %v378_v56  ;;  %p1457_p7 = pnand %p1456_p4, %p1450_p12 }
  0x4f   : > { %778 = vperm.xlu1 %1373, %v1769_v18   ;;  %1372 = vset.pattern.permute.xlu0 %v1612_v26 }
  0x50   : > { %774 = vperm.xlu0 %1372, %v1765_v12  }
  0x51   : > { %705 = vmatpush1.bf16.msra.mxu0 %v1416_v27 }
  0x53   : > { %1374 = vset.pattern.permute.xlu1 %v1613_v28 }
  0x54   : > { %1267 = vmatmul.mubr.msk.bf16.vlgmr.msra.gmra.mrb[8].mxu0 %vm526_vm0, %v351_v13  ;;  %798 = vperm.xlu1 %1374, %v1765_v12  }
  0x55   : > { %1375 = vset.pattern.permute.xlu0 %v1613_v28 }
  0x56   : > { %802 = vperm.xlu0 %1375, %v1769_v18  }
  0x58   : > { %1376 = vset.pattern.permute.xlu1 %v1614_v29 }
  0x59   : > { %808 = vperm.xlu1 %1376, %v1765_v12  }
  0x5a   : > { %1377 = vset.pattern.permute.xlu0 %v1615_v30 }
  0x5b   : > { %844 = vperm.xlu0 %1377, %v1765_v12  }
  0x5d   : > { %812 = vperm.xlu1 %1376, %v1769_v18  }
  0x5f   : > { %1380 = vset.pattern.permute.xlu0 %v1616_v31 }
  0x60   : > { %858 = vperm.xlu0 %1380, %v1769_v18  }
  0x61   : > { %1378 = vset.pattern.permute.xlu1 %v1615_v30 }
  0x62   : > { %848 = vperm.xlu1 %1378, %v1769_v18  }
  0x64   : > { %1382 = vset.pattern.permute.xlu0 %v1617_v32 }
  0x65   : > { %866 = vperm.xlu0 %1382, %v1765_v12  }
  0x66   : > { %1379 = vset.pattern.permute.xlu1 %v1616_v31 }
  0x67   : > { %854 = vperm.xlu1 %1379, %v1765_v12  }
  0x69   : > { %1385 = vset.pattern.permute.xlu0 %v1618_v33 }
  0x6a   : > { %790 = vperm.xlu0 %1385, %v1769_v18  }
  0x6b   : > { %1381 = vset.pattern.permute.xlu1 %v1619_v34 }
  0x6c   : > { %820 = vperm.xlu1 %1381, %v1765_v12  }
  0x6e   : > { %1387 = vset.pattern.permute.xlu0 %v1620_v35 }
  0x6f   : > { %878 = vperm.xlu0 %1387, %v1765_v12  }
  0x70   : > { %824 = vperm.xlu1 %1381, %v1769_v18  }
  0x74   : > { %1383 = vset.pattern.permute.xlu1 %v1617_v32 }
  0x75   : > { %870 = vperm.xlu1 %1383, %v1769_v18  }
  0x79   : > { %1384 = vset.pattern.permute.xlu1 %v1618_v33 }
  0x7a   : > { %786 = vperm.xlu1 %1384, %v1765_v12  }
  0x7e   : > { %1386 = vset.pattern.permute.xlu1 %v1621_v36 }
  0x7f   : > { %832 = vperm.xlu1 %1386, %v1765_v12   ;;  %v1857_v12 = vrot.slane %v372_v59, %v402_v63 }
  0x83   : > { %836 = vperm.xlu1 %1386, %v1769_v18  }
  0x87   : > { %1388 = vset.pattern.permute.xlu1 %v1620_v35 }
  0x88   : > { %882 = vperm.xlu1 %1388, %v1769_v18   ;;  %v1863_v18 = vrot.slane %v372_v59, %v406_v3 }
  0xbf   : > { %v1801_v37 = vpop.permute.xlu1 %762  ;;  %v1811_v42 = vpop.permute.xlu0 %751 }
  0xc7   : > { %v1803_v38 = vpop.permute.xlu1 %766  ;;  %v1815_v44 = vpop.permute.xlu0 %756 }
  0xce   : > { %v1805_v39 = vpop.permute.xlu1 %778 }
  0xcf   : > { %v1819_v46 = vpop.permute.xlu0 %774 }
  0xd3   : > { %v1807_v40 = vpop.permute.xlu1 %798 }
  0xd5   : > { %v1823_v48 = vpop.permute.xlu0 %802 }
  0xd8   : > { %v1809_v41 = vpop.permute.xlu1 %808 }
  0xda   : > { %v1827_v50 = vpop.permute.xlu0 %844 }
  0xdc   : > { %v1813_v43 = vpop.permute.xlu1 %812 }
  0xdf   : > { %v1831_v53 = vpop.permute.xlu0 %858 }
  0xe1   : > { %v1817_v45 = vpop.permute.xlu1 %848 }
  0xe4   : > { %v1838_v58 = vpop.permute.xlu0 %866 }
  0xe6   : > { %v1821_v47 = vpop.permute.xlu1 %854 }
  0xe9   : > { %v1849_v7 = vpop.permute.xlu0 %790 }
  0xeb   : > { %v1825_v49 = vpop.permute.xlu1 %820 }
  0xef   : > { %v1829_v52 = vpop.permute.xlu1 %824 }
  0xf4   : > { %v1836_v55 = vpop.permute.xlu1 %870 }
  0xf9   : > { %v1847_v6 = vpop.permute.xlu1 %786 }
 0x117   : > { %v564_v9 = vpop.f32.mrb[0].mxu0  ;;  %v607_v10 = vpop.f32.mrb[0].mxu1 }
 0x118   : > { %v565_v13 = vadd.f32 %v564_v9, %v379_v0  ;;  %v608_v14 = vadd.f32 %v607_v10, %v387_v1  ;;  %v566_v15 = vpop.f32.mrb[1].mxu0  ;;  %v609_v16 = vpop.f32.mrb[1].mxu1 }
 0x119   : > { %v567_v19 = vadd.f32 %v566_v15, %v383_v4  ;;  %v610_v20 = vadd.f32 %v609_v16, %v391_v5  ;;  %v568_v21 = vpop.f32.mrb[2].mxu0  ;;  %v611_v22 = vpop.f32.mrb[2].mxu1 }
 0x11a   : > { %745 = vst [vmem:[%s1844_s18] sm:$0xff] %v565_v13  ;;  %v769_v25 = vmul.f32 %v1801_v37, %v608_v14  ;;  %v815_v26 = vmul.f32 %v1809_v41, %v608_v14  ;;  %v861_v27 = vmul.f32 %v1821_v47, %v608_v14  ;;  %v569_v28 = vadd.f32 %v568_v21, %v379_v0  ;;  %v570_v29 = vpop.f32.mrb[3].mxu0  ;;  %v613_v30 = vpop.f32.mrb[3].mxu1 }
 0x11b   : > { %v759_v31 = vmul.f32 %v1811_v42, %v567_v19  ;;  %v805_v32 = vmul.f32 %v1807_v40, %v567_v19  ;;  %v851_v33 = vmul.f32 %v1827_v50, %v567_v19  ;;  %v781_v34 = vmul.f32 %v1819_v46, %v610_v20 }
 0x11c   : > { %v827_v35 = vmul.f32 %v1825_v49, %v610_v20  ;;  %v873_v36 = vmul.f32 %v1838_v58, %v610_v20  ;;  %746 = vst [vmem:[%s1844_s18 + $0x8] sm:$0xff] %v569_v28  ;;  %v612_v51 = vadd.f32 %v611_v22, %v387_v1  ;;  %v571_v54 = vadd.f32 %v570_v29, %v383_v4 }
 0x11d   : > { %v771_v56 = vadd.f32 %v769_v25, %v759_v31  ;;  %v817_v57 = vadd.f32 %v815_v26, %v805_v32  ;;  %v614_v59 = vadd.f32 %v613_v30, %v391_v5  ;;  %v863_v60 = vadd.f32 %v861_v27, %v851_v33 }
 0x11e   : > { %1460 = shalt.err (!%p1457_p7)
}
 0x11f   : > { %s1461_s18 = scalar_lea.hbm %s1872_s22, 256  ;;  %s1465_s21 = scalar_lea.hbm %s2171_s4, 512 }
 0x120   : > { %p1462_p8 = scmp.ne.s32.totalorder %s1872_s22, %s1461_s18  ;;  %p1466_p1 = scmp.lt.u32.totalorder %s1872_s22, %s2171_s4 }
 0x121   : > { %p1467_p0 = scmp.lt.u32.totalorder %s1465_s21, %s1461_s18  ;;  %p1469_p6 = scmp.lt.u32.totalorder %s1461_s18, %s1872_s22 }
 0x122   : > { %p1463_p11 = pnand %p1462_p8, %p2188_p9 }
 0x123   : > { %p1468_p5 = por %p1467_p0, %p1466_p1 }
 0x124   : > { %p1464_p13 = pneg %p1463_p11 }
 0x125   : > { %p1470_p10 = por %p1469_p6, %p1468_p5 }
 0x127   : > { %p1471_p12 = pnand %p1470_p10, %p1464_p13 }
 0x129   : > { %1474 = shalt.err (!%p1471_p12)
}
 0x12a   : > { %s1623_s14 = smov 128   ;;  %s1624_s15 = smov 8   ;;  %v770_v61 = vmul.f32 %v1803_v38, %v612_v51  ;;  %v816_v62 = vmul.f32 %v1813_v43, %v612_v51  ;;  %v862_v63 = vmul.f32 %v1831_v53, %v612_v51  ;;  %v1915_v0 = vpop.permute.xlu1 %832  ;;  %v760_v1 = vmul.f32 %v1815_v44, %v571_v54  ;;  %v650_v8 = vpop.f32.mrb[4].mxu0 }
 0x12b   : > { %1291 = dma.vmem_to_hbm [thread:$0]  (%p2188_p9), %s1859_s19, 256, %s1872_s22, %s974_s9, %s1623_s14, %s1623_s14, %s1624_s15   ;;  %v783_v2 = vadd.f32 %v781_v34, %v771_v56  ;;  %v829_v3 = vadd.f32 %v827_v35, %v817_v57  ;;  %v806_v4 = vmul.f32 %v1823_v48, %v571_v54  ;;  %v852_v5 = vmul.f32 %v1817_v45, %v571_v54  ;;  %v1920_v9 = vpop.permute.xlu0 %878  ;;  %v693_v16 = vpop.f32.mrb[4].mxu1 }
 0x12c   : > { %v772_v10 = vadd.f32 %v770_v61, %v760_v1  ;;  %v782_v13 = vmul.f32 %v1805_v39, %v614_v59  ;;  %v828_v14 = vmul.f32 %v1829_v52, %v614_v59  ;;  %v1925_v15 = vmul.f32 %v1836_v55, %v614_v59  ;;  %v652_v19 = vpop.f32.mrb[5].mxu0  ;;  %v695_v26 = vpop.f32.mrb[5].mxu1  ;;  %s1933_s19 = scalar_lea.vmem [#allocation6], %s1883_s23  ;;  %s1969_s9 = smul.u32 768, %s1691_s28 }
 0x12d   : > { %v793_v20 = vadd.f32 %v1847_v6, %v783_v2  ;;  %v839_v21 = vadd.f32 %v1915_v0, %v829_v3  ;;  %v818_v22 = vadd.f32 %v816_v62, %v806_v4  ;;  %v651_v25 = vadd.f32 %v650_v8, %v1855_v11  ;;  %v654_v27 = vpop.f32.mrb[6].mxu0  ;;  %v697_v32 = vpop.f32.mrb[6].mxu1  ;;  %s1019_s22 = sshll.u32 %s1933_s19, 4  ;;  %s978_s18 = sand.u32 1, %s1691_s28   ;;  %s1981_s22 = int_to_ptr.vmem [resolvable:$true] %s1019_s22 }
 0x12e   : > { %v784_v28 = vadd.f32 %v782_v13, %v772_v10  ;;  %v694_v29 = vadd.f32 %v693_v16, %v1857_v12  ;;  %v875_v30 = vadd.f32 %v873_v36, %v863_v60  ;;  %v653_v31 = vadd.f32 %v652_v19, %v1861_v17  ;;  %v656_v33 = vpop.f32.mrb[7].mxu0  ;;  %v699_v36 = vpop.f32.mrb[7].mxu1  ;;  %s1995_s21 = scalar_lea.hbm %s2172_s5, %s1969_s9  ;;  %s1998_s17 = scalar_lea.vmem [#allocation8], %s1883_s23 }
 0x12f   : > { %795 = vst [vmem:[%s1933_s19] sm:$0xff] %v793_v20  ;;  %841 = vst [vmem:[%s1933_s19 + $0x8] sm:$0xff] %v839_v21  ;;  %v830_v34 = vadd.f32 %v828_v14, %v818_v22  ;;  %v889_v35 = vmul.f32 %v1811_v42, %v651_v25  ;;  %v903_v51 = vmul.f32 %v1807_v40, %v651_v25  ;;  %v1941_v57 = vpop.permute.xlu1 %836  ;;  %v736_v21 = vpop.f32.mrb[8].mxu0  ;;  %s2021_s14 = scalar_lea.sflag [#allocation7], %s978_s18  ;;  %s1475_s15 = scalar_lea.vmem %s1981_s22, 768 }
 0x130   : > { %v917_v54 = vmul.f32 %v1827_v50, %v651_v25  ;;  %v794_v56 = vadd.f32 %v1849_v7, %v784_v28  ;;  %v895_v59 = vmul.f32 %v1819_v46, %v694_v29  ;;  %v909_v60 = vmul.f32 %v1825_v49, %v694_v29  ;;  %p1476_p2 = scmp.ne.s32.totalorder %s1981_s22, %s1475_s15 }
 0x131   : > { %v923_v61 = vmul.f32 %v1838_v58, %v694_v29  ;;  %v840_v62 = vadd.f32 %v1941_v57, %v830_v34  ;;  %v885_v1 = vadd.f32 %v1920_v9, %v875_v30  ;;  %v891_v2 = vmul.f32 %v1801_v37, %v653_v31 }
 0x132   : > { %v905_v3 = vmul.f32 %v1809_v41, %v653_v31  ;;  %796 = vst [vmem:[%s1933_s19 + $0x18] sm:$0xff] %v794_v56  ;;  %v919_v4 = vmul.f32 %v1821_v47, %v653_v31  ;;  %v696_v8 = vadd.f32 %v695_v26, %v1863_v18  ;;  %v655_v10 = vadd.f32 %v654_v27, %v1855_v11  ;;  %p1477_p3 = pnand %p1476_p2, %p2188_p9 }
 0x133   : > { %v698_v13 = vadd.f32 %v697_v32, %v1857_v12  ;;  %842 = vst [vmem:[%s1933_s19 + $0x20] sm:$0xff] %v840_v62  ;;  %887 = vst [vmem:[%s1933_s19 + $0x10] sm:$0xff] %v885_v1  ;;  %v893_v14 = vadd.f32 %v891_v2, %v889_v35  ;;  %v864_v19 = vadd.f32 %v862_v63, %v852_v5  ;;  %v738_v12 = vpop.f32.mrb[9].mxu0  ;;  %v1977_v30 = vpop.permute.xlu1 %882 }
 0x134   : > { %v907_v16 = vadd.f32 %v905_v3, %v903_v51  ;;  %v657_v20 = vadd.f32 %v656_v33, %v1861_v17  ;;  %v921_v22 = vadd.f32 %v919_v4, %v917_v54  ;;  %v1960_v25 = vmul.f32 %v1811_v42, %v696_v8  ;;  %v740_v5 = vpop.f32.mrb[10].mxu0  ;;  %p1478_p4 = pneg %p1477_p3 }
 0x135   : > { %v1963_v26 = vmul.f32 %v1807_v40, %v696_v8  ;;  %v1966_v11 = vmul.f32 %v1827_v50, %v696_v8  ;;  %v897_v27 = vadd.f32 %v895_v59, %v893_v14  ;;  %v890_v63 = vmul.f32 %v1815_v44, %v655_v10  ;;  %v1979_v31 = vpop.f32.mrb[11].mxu0 }
 0x136   : > { %v911_v28 = vadd.f32 %v909_v60, %v907_v16  ;;  %v904_v17 = vmul.f32 %v1823_v48, %v655_v10  ;;  %v925_v42 = vadd.f32 %v923_v61, %v921_v22  ;;  %v918_v40 = vmul.f32 %v1817_v45, %v655_v10 }
 0x137   : > { %v896_v29 = vmul.f32 %v1805_v39, %v698_v13  ;;  %v910_v50 = vmul.f32 %v1829_v52, %v698_v13  ;;  %v899_v32 = vadd.f32 %v897_v27, %v1847_v6  ;;  %v924_v34 = vmul.f32 %v1836_v55, %v698_v13 }
 0x138   : > { %v913_v33 = vadd.f32 %v911_v28, %v1915_v0  ;;  %v876_v35 = vadd.f32 %v1925_v15, %v864_v19  ;;  %v927_v51 = vadd.f32 %v925_v42, %v1920_v9  ;;  %v892_v54 = vmul.f32 %v1803_v38, %v657_v20 }
 0x139   : > { %v906_v56 = vmul.f32 %v1813_v43, %v657_v20  ;;  %v920_v59 = vmul.f32 %v1831_v53, %v657_v20  ;;  %901 = vst [vmem:[%s1998_s17] sm:$0xff] %v899_v32  ;;  %v700_v60 = vadd.f32 %v699_v36, %v1863_v18  ;;  %v737_v61 = vadd.f32 %v736_v21, %v1865_v23 }
 0x13a   : > { %915 = vst [vmem:[%s1998_s17 + $0x8] sm:$0xff] %v913_v33  ;;  %v886_v15 = vadd.f32 %v1977_v30, %v876_v35  ;;  %v739_v62 = vadd.f32 %v738_v12, %v1867_v24  ;;  %929 = vst [vmem:[%s1998_s17 + $0x10] sm:$0xff] %v927_v51  ;;  %v894_v1 = vadd.f32 %v892_v54, %v890_v63 }
 0x13b   : > { %v908_v2 = vadd.f32 %v906_v56, %v904_v17  ;;  %v922_v3 = vadd.f32 %v920_v59, %v918_v40  ;;  %v741_v4 = vadd.f32 %v740_v5, %v1865_v23  ;;  %v932_v8 = vmul.f32 %v1815_v44, %v700_v60 }
 0x13c   : > { %888 = vst [vmem:[%s1933_s19 + $0x28] sm:$0xff] %v886_v15  ;;  %v2012_v18 = vmul.f32 %v1823_v48, %v700_v60  ;;  %v2015_v36 = vmul.f32 %v1817_v45, %v700_v60  ;;  %v933_v10 = vmul.f32 %v1801_v37, %v737_v61  ;;  %v898_v13 = vadd.f32 %v896_v29, %v894_v1  ;;  %s1625_s19 = smov [#allocation6]  }
 0x13d   : > { %v912_v14 = vadd.f32 %v910_v50, %v908_v2  ;;  %v926_v16 = vadd.f32 %v924_v34, %v922_v3  ;;  %v947_v19 = vmul.f32 %v1809_v41, %v737_v61  ;;  %s1479_s16 = sshll.u32 %s1625_s19, 4  ;;  %s1480_s16 = int_to_ptr.vmem [resolvable:$false] %s1479_s16 }
 0x13e   : > { %s1481_s20 = scalar_lea.vmem %s1480_s16, 1536  ;;  %p1482_p7 = scmp.lt.s32.totalorder %s1981_s22, %s1480_s16 }
 0x13f   : > { %p1483_p8 = scmp.lt.s32.totalorder %s1481_s20, %s1475_s15 }
 0x141   : > { %p1484_p11 = por %p1483_p8, %p1482_p7 }
 0x143   : > { %p1485_p13 = pnand %p1484_p11, %p1478_p4 }
 0x145   : > { %1488 = shalt.err (!%p1485_p13)
}
 0x146   : > { %s1489_s28 = scalar_lea.hbm %s1995_s21, 768  ;;  %s1493_s19 = scalar_lea.hbm %s2172_s5, 1536 }
 0x147   : > { %p1490_p1 = scmp.ne.s32.totalorder %s1995_s21, %s1489_s28  ;;  %p1494_p6 = scmp.lt.u32.totalorder %s1995_s21, %s2172_s5 }
 0x148   : > { %p1495_p10 = scmp.lt.u32.totalorder %s1493_s19, %s1489_s28  ;;  %p1497_p2 = scmp.lt.u32.totalorder %s1489_s28, %s1995_s21 }
 0x149   : > { %p1491_p0 = pnand %p1490_p1, %p2188_p9 }
 0x14a   : > { %p1496_p12 = por %p1495_p10, %p1494_p6 }
 0x14b   : > { %p1492_p5 = pneg %p1491_p0 }
 0x14c   : > { %p1498_p3 = por %p1497_p2, %p1496_p12 }
 0x14e   : > { %p1499_p4 = pnand %p1498_p3, %p1492_p5 }
 0x150   : > { %1502 = shalt.err (!%p1499_p4)
}
 0x151   : > { %s2179_s15 = smov 384   ;;  %s1627_s20 = smov 24   ;;  %v935_v37 = vadd.f32 %v933_v10, %v1960_v25  ;;  %v961_v41 = vmul.f32 %v1821_v47, %v737_v61  ;;  %v937_v44 = vmul.f32 %v1819_v46, %v739_v62  ;;  %v951_v45 = vmul.f32 %v1825_v49, %v739_v62 }
 0x152   : > { %1292 = dma.vmem_to_hbm [thread:$0]  (%p2188_p9), %s1981_s22, 768, %s1995_s21, %s2021_s14, %s2179_s15, %s2179_s15, %s1627_s20   ;;  %v900_v48 = vadd.f32 %v898_v13, %v1849_v7  ;;  %v914_v23 = vadd.f32 %v912_v14, %v1941_v57  ;;  %v928_v20 = vadd.f32 %v926_v16, %v1977_v30  ;;  %v949_v21 = vadd.f32 %v947_v19, %v1963_v26 }
 0x153   : > { %s2189_s29 = sshll.u32 %s1998_s17, 4  ;;  %s2064_s13 = scalar_lea.hbm %s2173_s6, %s1969_s9  ;;  %v963_v46 = vadd.f32 %v961_v41, %v1966_v11  ;;  %v939_v47 = vadd.f32 %v937_v44, %v935_v37  ;;  %v965_v49 = vmul.f32 %v1838_v58, %v739_v62  ;;  %v934_v22 = vmul.f32 %v1803_v38, %v741_v4  ;;  %s2054_s29 = int_to_ptr.vmem [resolvable:$true] %s2189_s29 }
 0x154   : > { %902 = vst [vmem:[%s1998_s17 + $0x18] sm:$0xff] %v900_v48  ;;  %916 = vst [vmem:[%s1998_s17 + $0x20] sm:$0xff] %v914_v23  ;;  %v953_v25 = vadd.f32 %v951_v45, %v949_v21  ;;  %v948_v26 = vmul.f32 %v1813_v43, %v741_v4  ;;  %v962_v12 = vmul.f32 %v1831_v53, %v741_v4  ;;  %s1503_s28 = scalar_lea.vmem %s2054_s29, 768  ;;  %s1628_s18 = smov [#allocation8]  }
 0x155   : > { %930 = vst [vmem:[%s1998_s17 + $0x28] sm:$0xff] %v928_v20  ;;  %v743_v27 = vadd.f32 %v1979_v31, %v1867_v24  ;;  %v941_v11 = vadd.f32 %v939_v47, %v1847_v6  ;;  %v967_v28 = vadd.f32 %v965_v49, %v963_v46  ;;  %v936_v63 = vadd.f32 %v934_v22, %v932_v8  ;;  %p1504_p7 = scmp.ne.s32.totalorder %s2054_s29, %s1503_s28  ;;  %s1507_s17 = sshll.u32 %s1628_s18, 4  ;;  %s1508_s17 = int_to_ptr.vmem [resolvable:$false] %s1507_s17 }
 0x156   : > { %s1509_s19 = scalar_lea.vmem %s1508_s17, 1536  ;;  %p1510_p13 = scmp.lt.s32.totalorder %s2054_s29, %s1508_s17 }
 0x157   : > { %p1505_p8 = pnand %p1504_p7, %p2188_p9  ;;  %p1511_p1 = scmp.lt.s32.totalorder %s1509_s19, %s1503_s28 }
 0x159   : > { %p1506_p11 = pneg %p1505_p8  ;;  %p1512_p0 = por %p1511_p1, %p1510_p13 }
 0x15b   : > { %p1513_p5 = pnand %p1512_p0, %p1506_p11 }
 0x15d   : > { %1516 = shalt.err (!%p1513_p5)
}
 0x15e   : > { %s1517_s16 = scalar_lea.hbm %s2064_s13, 768  ;;  %s1521_s18 = scalar_lea.hbm %s2173_s6, 1536 }
 0x15f   : > { %p1518_p6 = scmp.ne.s32.totalorder %s2064_s13, %s1517_s16  ;;  %p1522_p2 = scmp.lt.u32.totalorder %s2064_s13, %s2173_s6 }
 0x160   : > { %p1523_p3 = scmp.lt.u32.totalorder %s1521_s18, %s1517_s16  ;;  %p1525_p7 = scmp.lt.u32.totalorder %s1517_s16, %s2064_s13 }
 0x161   : > { %p1519_p10 = pnand %p1518_p6, %p2188_p9 }
 0x162   : > { %p1524_p4 = por %p1523_p3, %p1522_p2 }
 0x163   : > { %p1520_p12 = pneg %p1519_p10 }
 0x164   : > { %p1526_p8 = por %p1525_p7, %p1524_p4 }
 0x166   : > { %p1527_p11 = pnand %p1526_p8, %p1520_p12 }
 0x168   : > { %1530 = shalt.err (!%p1527_p11)
}
 0x169   : > { %s2190_s28 = smov 384   ;;  %v955_v38 = vadd.f32 %v953_v25, %v1915_v0  ;;  %v950_v43 = vadd.f32 %v948_v26, %v2012_v18  ;;  %v964_v53 = vadd.f32 %v962_v12, %v2015_v36  ;;  %v938_v58 = vmul.f32 %v1805_v39, %v743_v27  ;;  %s331_s15 = scalar_lea.vmem [#allocation9], %s1883_s23 }
 0x16a   : > { %1293 = dma.vmem_to_hbm [thread:$0]  (%p2188_p9), %s2054_s29, 768, %s2064_s13, %s2021_s14, %s2190_s28, %s2190_s28, %s1627_s20   ;;  %v969_v6 = vadd.f32 %v967_v28, %v1920_v9  ;;  %v952_v24 = vmul.f32 %v1829_v52, %v743_v27  ;;  %v966_v17 = vmul.f32 %v1836_v55, %v743_v27 }
 0x16b   : > { %943 = vst [vmem:[%s331_s15] sm:$0xff] %v941_v11  ;;  %s1053_s19 = sshll.u32 %s331_s15, 4  ;;  %957 = vst [vmem:[%s331_s15 + $0x8] sm:$0xff] %v955_v38  ;;  %v940_v0 = vadd.f32 %v938_v58, %v936_v63  ;;  %s2119_s29 = scalar_lea.hbm %s2174_s7, %s1969_s9  ;;  %s2111_s19 = int_to_ptr.vmem [resolvable:$true] %s1053_s19 }
 0x16c   : > { %971 = vst [vmem:[%s331_s15 + $0x10] sm:$0xff] %v969_v6  ;;  %v954_v5 = vadd.f32 %v952_v24, %v950_v43  ;;  %v968_v42 = vadd.f32 %v966_v17, %v964_v53  ;;  %s989_s13 = scalar_lea.sflag [#allocation10], %s1834_s8  ;;  %s1531_s16 = scalar_lea.vmem %s2111_s19, 768 }
 0x16d   : > { %v942_v40 = vadd.f32 %v940_v0, %v1849_v7  ;;  %p1532_p13 = scmp.ne.s32.totalorder %s2111_s19, %s1531_s16  ;;  %s1629_s22 = smov [#allocation9]  }
 0x16e   : > { %v956_v39 = vadd.f32 %v954_v5, %v1941_v57  ;;  %v970_v52 = vadd.f32 %v968_v42, %v1977_v30  ;;  %s1535_s21 = sshll.u32 %s1629_s22, 4  ;;  %s1536_s21 = int_to_ptr.vmem [resolvable:$false] %s1535_s21 }
 0x16f   : > { %944 = vst [vmem:[%s331_s15 + $0x18] sm:$0xff] %v942_v40  ;;  %p1533_p1 = pnand %p1532_p13, %p2188_p9  ;;  %s1537_s18 = scalar_lea.vmem %s1536_s21, 1536 }
 0x170   : > { %958 = vst [vmem:[%s331_s15 + $0x20] sm:$0xff] %v956_v39  ;;  %972 = vst [vmem:[%s331_s15 + $0x28] sm:$0xff] %v970_v52  ;;  %p1538_p5 = scmp.lt.s32.totalorder %s2111_s19, %s1536_s21  ;;  %p1539_p6 = scmp.lt.s32.totalorder %s1537_s18, %s1531_s16 }
 0x171   : > { %p1534_p0 = pneg %p1533_p1 }
 0x172   : > { %p1540_p10 = por %p1539_p6, %p1538_p5 }
 0x174   : > { %p1541_p12 = pnand %p1540_p10, %p1534_p0 }
 0x176   : > { %1544 = shalt.err (!%p1541_p12)
}
 0x177   : > { %s1545_s9 = scalar_lea.hbm %s2119_s29, 768  ;;  %s1549_s23 = scalar_lea.hbm %s2174_s7, 1536 }
 0x178   : > { %p1546_p2 = scmp.ne.s32.totalorder %s2119_s29, %s1545_s9  ;;  %p1550_p7 = scmp.lt.u32.totalorder %s2119_s29, %s2174_s7 }
 0x179   : > { %p1551_p8 = scmp.lt.u32.totalorder %s1549_s23, %s1545_s9  ;;  %p1553_p13 = scmp.lt.u32.totalorder %s1545_s9, %s2119_s29 }
 0x17a   : > { %p1547_p3 = pnand %p1546_p2, %p2188_p9 }
 0x17b   : > { %p1552_p11 = por %p1551_p8, %p1550_p7 }
 0x17c   : > { %p1548_p4 = pneg %p1547_p3 }
 0x17d   : > { %p1554_p1 = por %p1553_p13, %p1552_p11 }
 0x17f   : > { %p1555_p0 = pnand %p1554_p1, %p1548_p4 }
 0x181   : > { %1558 = shalt.err (!%p1555_p0)
}
 0x182   : > { %1294 = dma.vmem_to_hbm [thread:$0]  (%p2188_p9), %s2111_s19, 768, %s2119_s29, %s989_s13, %s2190_s28, %s2190_s28, %s1627_s20  }
 0x183 PF: > { %p1318_p5 = scmp.ge.s32.totalorder %s1605_s27, 2  ;;  %s1068_s16 = sand.u32 1, %s1593_s24  }
 0x184   : > { %p2191_p6 = scmp.ne.s32.totalorder %s2182_s12, 0  ;;  %s1069_s21 = scalar_lea.sflag [#allocation4], %s1068_s16 }
 0x186   : > { %p1304_p10 = pnand %p1318_p5, %p2191_p6 }
 0x188   : > { %1580 = dma.done.wait (!%p1304_p10), %s1069_s21, 256  }
 0x189   : > { %1582 = vsyncadd (!%p1304_p10), %s1069_s21, 4294967040  ;;  %s2192_s11 = sadd.s32 4294967294, %s1605_s27  }
 0x18a   : > { %s1077_s18 = sand.u32 1, %s2192_s11  }
 0x18b   : > { %s1078_s9 = scalar_lea.sflag [#allocation7], %s1077_s18 }
 0x18c   : > { %1584 = dma.done.wait (!%p1304_p10), %s1078_s9, 1536  }
 0x18d   : > { %1586 = vsyncadd (!%p1304_p10), %s1078_s9, 4294965760  ;;  %s1096_s8 = scalar_lea.sflag [#allocation10], %s1068_s16 }
 0x18e   : > { %1588 = dma.done.wait (!%p1304_p10), %s1096_s8, 768  }
 0x18f   : > { %1590 = vsyncadd (!%p1304_p10), %s1096_s8, 4294966528  ;;  %p25_p9 = scmp.ge.s32.totalorder %s1695_s30, 4   ;;  %s2193_s24 = smov %s1597_s25 }
 0x190   : > { %s2194_s25 = smov %s1601_s26  ;;  %s2195_s26 = smov %s1708_s10 }
 0x191   : > { %s2196_s27 = smov %s1695_s30  ;;  %27 = sbr.rel (!%p25_p9) target bundleno = 8 (0x8), region = 128 }
 0x198   :  { %1101 = vsyncpa [#allocation3], 1 }
 0x199   :  { %1103 = vsyncpa [#allocation3 + $0x1], 1 }
 0x19a   :  { %1104 = vsyncpa [#allocation4], 1 }
 0x19b   :  { %1106 = vsyncpa [#allocation4 + $0x1], 1 }
 0x19c   :  { %1107 = vsyncpa [#allocation7], 1 }
 0x19d   :  { %1109 = vsyncpa [#allocation7 + $0x1], 1 }
 0x19e   :  { %1110 = vsyncpa [#allocation10], 1 }
 0x19f   :  { %1112 = vsyncpa [#allocation10 + $0x1], 1 }

</bundles_post_ra>
